<compile_context>
chip_gen: v7x
topology: tpu7x:2x2x1
jax: 0.10.0
libtpu: 0.0.40
codegen_flags: <defaults>
</compile_context>

<pallas_src>
import jax
import jax.numpy as jnp
from jax.experimental import pallas as pl
from jax.experimental.pallas import tpu as pltpu

IN_FEATURES = 768
HIDDEN = 256
OUT_FEATURES = 1
_LANE = 128  # lane width; batch tiles are kept multiples of this


def _round_up(n, m):
    return ((n + m - 1) // m) * m


def _mlp_kernel(x_ref, w1_ref, b1_ref, w2_ref, b2_ref, o_ref):
    # Layer 1 on the MXU: [tb, 768] @ [768, 256], f32 accumulate.
    h = jnp.dot(x_ref[...], w1_ref[...], preferred_element_type=jnp.float32)
    # Bias + ReLU on the VPU, in f32 (rides free slots under the matmul).
    h = jnp.maximum(h + b1_ref[...], 0.0)
    # Dropout(0.2): identity in eval mode.

    # Layer 2: contract the 256-feature axis against the (sublane-broadcast)
    # weight row, producing a lane-dense [8, tb] result (rows identical).
    # This avoids an N=1 MXU output column and a masked 1-lane output store.
    s = jnp.einsum("od,bd->ob", w2_ref[...], h,
                   preferred_element_type=jnp.float32)
    # Row 0 + scalar bias -> [1, tb], stored lane-dense.
    o_ref[...] = (s[0:1, :] + b2_ref[...]).astype(o_ref.dtype)


def confidence_model_forward(x, w1, b1, w2, b2, *, block_b=1024,
                             input_dtype=None):
    """x: [B, 768] -> [B, 1] float32.

    block_b:     batch tile (rounded to a multiple of 128).  Default 1024 keeps
                 2 x (block_b*768*4) + resident weights well under the scoped
                 VMEM limit on all of v5e/v6e/v7x.  Cap at ~2048 on v7x.
    input_dtype: optionally jnp.bfloat16 to cast x/w1 for the first matmul
                 (f32 accumulate); recommended on v6e/v7x.
    """
    B = x.shape[0]

    # Lane-aligned batch tile; don't over-pad tiny batches.
    bb = min(block_b, _round_up(B, _LANE))
    bb = max(_LANE, _round_up(bb, _LANE))
    B_pad = _round_up(B, bb)
    num_blocks = B_pad // bb

    x_p = x if B_pad == B else jnp.pad(x, ((0, B_pad - B), (0, 0)))

    if input_dtype is not None:
        x_p = x_p.astype(input_dtype)
        w1 = w1.astype(input_dtype)

    # Second-layer weight as a lane-major row, pre-broadcast to the native
    # 8-sublane tile (tiny one-time constant prep, 8 KiB).
    w2_row = jnp.broadcast_to(
        w2.reshape(1, HIDDEN).astype(jnp.float32), (8, HIDDEN))
    b1 = b1.astype(jnp.float32)
    b2 = b2.reshape(1, OUT_FEATURES).astype(jnp.float32)

    out_row = pl.pallas_call(
        _mlp_kernel,
        out_shape=jax.ShapeDtypeStruct((1, B_pad), jnp.float32),
        grid_spec=pltpu.PrefetchScalarGridSpec(
            num_scalar_prefetch=0,
            grid=(num_blocks,),
            in_specs=[
                # activations: tiled over batch (double-buffered / pipelined)
                pl.BlockSpec((bb, IN_FEATURES), lambda i: (i, 0)),
                # weights/biases: constant block index -> fetched once, resident
                pl.BlockSpec((IN_FEATURES, HIDDEN), lambda i: (0, 0)),
                pl.BlockSpec((1, HIDDEN), lambda i: (0, 0)),
                pl.BlockSpec((8, HIDDEN), lambda i: (0, 0)),
                pl.BlockSpec((1, OUT_FEATURES), lambda i: (0, 0)),
            ],
            # lane-dense output row: last block dim = bb (multiple of 128)
            out_specs=pl.BlockSpec((1, bb), lambda i: (0, i)),
        ),
        compiler_params=pltpu.CompilerParams(
            dimension_semantics=("parallel",),
        ),
    )(x_p, w1, b1, w2_row, b2)

    # (1, B_pad) -> (B, 1): drop padding rows, restore the module's output shape.
    return out_row[0, :B].reshape(B, 1)


def init_params(key):
    """Deterministic synthetic parameters (shapes match the PyTorch module)."""
    k1, k2, k3, k4 = jax.random.split(key, 4)
    s1 = 1.0 / jnp.sqrt(IN_FEATURES)
    s2 = 1.0 / jnp.sqrt(HIDDEN)
    w1 = jax.random.uniform(k1, (IN_FEATURES, HIDDEN), jnp.float32, -s1, s1)
    b1 = jax.random.uniform(k2, (1, HIDDEN), jnp.float32, -s1, s1)
    w2 = jax.random.uniform(k3, (HIDDEN, OUT_FEATURES), jnp.float32, -s2, s2)
    b2 = jax.random.uniform(k4, (1, OUT_FEATURES), jnp.float32, -s2, s2)
    return w1, b1, w2, b2


def _reference(x, w1, b1, w2, b2):
    return jnp.maximum(x @ w1 + b1, 0.0) @ w2 + b2


if __name__ == "__main__":
    key = jax.random.PRNGKey(0)
    k_x, k_p = jax.random.split(key)
    w1, b1, w2, b2 = init_params(k_p)

    # Small latency-style batch (f32).
    batch = 8
    x = jax.random.normal(k_x, (batch, IN_FEATURES), jnp.float32)
    out = jax.block_until_ready(confidence_model_forward(x, w1, b1, w2, b2))
    ref = _reference(x, w1, b1, w2, b2)
    assert out.shape == (batch, OUT_FEATURES)
    assert jnp.allclose(out, ref, atol=1e-4, rtol=1e-4)

    # Non-divisible batch with a multi-block grid (exercises padding + pipeline).
    batch2 = 300
    x2 = jax.random.normal(k_x, (batch2, IN_FEATURES), jnp.float32)
    out2 = jax.block_until_ready(
        confidence_model_forward(x2, w1, b1, w2, b2, block_b=128))
    ref2 = _reference(x2, w1, b1, w2, b2)
    assert out2.shape == (batch2, OUT_FEATURES)
    assert jnp.allclose(out2, ref2, atol=1e-4, rtol=1e-4)

    # bf16 input path (recommended on v6e/v7x): f32 accumulate, looser tolerance.
    out_bf16 = jax.block_until_ready(
        confidence_model_forward(x, w1, b1, w2, b2, input_dtype=jnp.bfloat16))
    assert jnp.allclose(out_bf16, ref, atol=5e-2, rtol=5e-2)

    print("KERNEL_OK")
</pallas_src>

<mosaic_0001>
module attributes {stable_mosaic.version = 11 : i64} {
  func.func @_mlp_kernel(%arg0: i32, %arg1: memref<128x768xf32, #tpu.memory_space<vmem>>, %arg2: memref<768x256xf32, #tpu.memory_space<vmem>>, %arg3: memref<1x256xf32, #tpu.memory_space<vmem>>, %arg4: memref<8x256xf32, #tpu.memory_space<vmem>>, %arg5: memref<1x1xf32, #tpu.memory_space<vmem>>, %arg6: memref<1x128xf32, #tpu.memory_space<vmem>>) attributes {dimension_semantics = [#tpu.dimension_semantics<parallel>], iteration_bounds = array<i64: 1>, scalar_prefetch = 0 : i64, scratch_operands = 0 : i64, tpu.core_type = #tpu.core_type<tc>, window_params = [{transform_indices = @transform_0, window_bounds = array<i64: 128, 768>}, {pipeline_mode = #tpu.pipeline_mode<synchronous>, transform_indices = @transform_1, window_bounds = array<i64: 768, 256>}, {pipeline_mode = #tpu.pipeline_mode<synchronous>, transform_indices = @transform_2, window_bounds = array<i64: 1, 256>}, {pipeline_mode = #tpu.pipeline_mode<synchronous>, transform_indices = @transform_3, window_bounds = array<i64: 8, 256>}, {pipeline_mode = #tpu.pipeline_mode<synchronous>, transform_indices = @transform_4, window_bounds = array<i64: 1, 1>}, {transform_indices = @transform_5, window_bounds = array<i64: 1, 128>}]} {
    %c0 = arith.constant 0 : index
    %c0_0 = arith.constant 0 : index
    %0 = vector.load %arg1[%c0, %c0_0] : memref<128x768xf32, #tpu.memory_space<vmem>>, vector<128x768xf32>
    %c0_1 = arith.constant 0 : index
    %c0_2 = arith.constant 0 : index
    %1 = vector.load %arg2[%c0_1, %c0_2] : memref<768x256xf32, #tpu.memory_space<vmem>>, vector<768x256xf32>
    %cst = arith.constant dense<0.000000e+00> : vector<128x256xf32>
    %2 = tpu.matmul %0, %1, %cst {dimension_numbers = #tpu.dot_dimension_numbers<[1], [0], [0], [1], [0, 0, 1, 1], [], []>} : vector<128x768xf32>, vector<768x256xf32>, vector<128x256xf32> -> vector<128x256xf32>
    %c0_3 = arith.constant 0 : index
    %c0_4 = arith.constant 0 : index
    %3 = vector.load %arg3[%c0_3, %c0_4] : memref<1x256xf32, #tpu.memory_space<vmem>>, vector<1x256xf32>
    %4 = vector.broadcast %3 : vector<1x256xf32> to vector<128x256xf32>
    %5 = arith.addf %2, %4 : vector<128x256xf32>
    %cst_5 = arith.constant 0.000000e+00 : f32
    %6 = vector.broadcast %cst_5 : f32 to vector<128x256xf32>
    %7 = arith.maximumf %5, %6 : vector<128x256xf32>
    %c0_6 = arith.constant 0 : index
    %c0_7 = arith.constant 0 : index
    %8 = vector.load %arg4[%c0_6, %c0_7] : memref<8x256xf32, #tpu.memory_space<vmem>>, vector<8x256xf32>
    "tpu.trace_start"() <{level = 10 : i32, message = "od,bd->ob"}> : () -> ()
    %cst_8 = arith.constant dense<0.000000e+00> : vector<8x128xf32>
    %9 = tpu.matmul %8, %7, %cst_8 {dimension_numbers = #tpu.dot_dimension_numbers<[1], [1], [0], [0], [0, 0, 1, 0], [], []>} : vector<8x256xf32>, vector<128x256xf32>, vector<8x128xf32> -> vector<8x128xf32>
    "tpu.trace_stop"() : () -> ()
    %10 = vector.extract_strided_slice %9 {offsets = [0, 0], sizes = [1, 128], strides = [1, 1]} : vector<8x128xf32> to vector<1x128xf32>
    %c0_9 = arith.constant 0 : index
    %c0_10 = arith.constant 0 : index
    %11 = vector.load %arg5[%c0_9, %c0_10] : memref<1x1xf32, #tpu.memory_space<vmem>>, vector<1x1xf32>
    %12 = vector.broadcast %11 : vector<1x1xf32> to vector<1x128xf32>
    %13 = arith.addf %10, %12 : vector<1x128xf32>
    %c0_11 = arith.constant 0 : index
    %c0_12 = arith.constant 0 : index
    %14 = vector.load %arg6[%c0_11, %c0_12] : memref<1x128xf32, #tpu.memory_space<vmem>>, vector<1x128xf32>
    tpu.vector_store %arg6[%c0_11, %c0_12], %13 {strides = array<i32>} : memref<1x128xf32, #tpu.memory_space<vmem>>, vector<1x128xf32>,
    return
  }
  func.func @transform_0(%arg0: i32) -> (i32, i32) {
    %c0_i32 = arith.constant 0 : i32
    %c0_i32_0 = arith.constant 0 : i32
    return %arg0, %c0_i32 : i32, i32
  }
  func.func @transform_1(%arg0: i32) -> (i32, i32) {
    %c0_i32 = arith.constant 0 : i32
    %c0_i32_0 = arith.constant 0 : i32
    %c0_i32_1 = arith.constant 0 : i32
    return %c0_i32, %c0_i32_0 : i32, i32
  }
  func.func @transform_2(%arg0: i32) -> (i32, i32) {
    %c0_i32 = arith.constant 0 : i32
    %c0_i32_0 = arith.constant 0 : i32
    %c0_i32_1 = arith.constant 0 : i32
    return %c0_i32, %c0_i32_0 : i32, i32
  }
  func.func @transform_3(%arg0: i32) -> (i32, i32) {
    %c0_i32 = arith.constant 0 : i32
    %c0_i32_0 = arith.constant 0 : i32
    %c0_i32_1 = arith.constant 0 : i32
    return %c0_i32, %c0_i32_0 : i32, i32
  }
  func.func @transform_4(%arg0: i32) -> (i32, i32) {
    %c0_i32 = arith.constant 0 : i32
    %c0_i32_0 = arith.constant 0 : i32
    %c0_i32_1 = arith.constant 0 : i32
    return %c0_i32, %c0_i32_0 : i32, i32
  }
  func.func @transform_5(%arg0: i32) -> (i32, i32) {
    %c0_i32 = arith.constant 0 : i32
    %c0_i32_0 = arith.constant 0 : i32
    return %c0_i32, %arg0 : i32, i32
  }
}

</mosaic_0001>

<bundles_post_ra>
// kernel: tpu_custom_call.1
= control target key start
LH: loop header
LB: loop body
LE: loop exit
PB: predicated region body
PF: predicated region fallthrough
CT: control target
= control target key end

     0   :  { %s1604_s0 = inlined_call_operand.hbm [shape: f32[128,768], index: 0, kind: input, shape index: {}]   ;;  %s1605_s1 = inlined_call_operand.hbm [shape: f32[768,256], index: 1, kind: input, shape index: {}]   ;;  %s1606_s2 = inlined_call_operand.vmem [shape: f32[1,256], index: 2, kind: input, shape index: {}]   ;;  %s1607_s3 = inlined_call_operand.hbm [shape: f32[8,256], index: 3, kind: input, shape index: {}]   ;;  %s1608_s4 = inlined_call_operand.<no memory space> [shape: f32[1,1], index: 4, kind: input, shape index: {}]   ;;  %s1609_s5 = inlined_call_operand.hbm [shape: f32[1,128], index: 5, kind: output, shape index: {}]  }
   0x1   :  { %v10_v0 = vstv %s1608_s4 }
   0x2   :  { %11 = vst [vmem:[#allocation2] sm:$0x1] %v10_v0 }
   0x3   :  { %12 = vsyncpa [#allocation4], 0 }
   0x4   :  { %13 = vsyncpa [#allocation7], 0 }
   0x5   :  { %14 = vsyncpa [#allocation5], 0  ;;  %s1401_s20 = smov [#allocation6]   ;;  %s1307_s24 = scalar_lea.hbm %s1605_s1, 24576 }
   0x6   :  { %s32_s21 = sshll.u32 %s1401_s20, 4  ;;  %p1308_p0 = scmp.ne.s32.totalorder %s1605_s1, %s1307_s24  ;;  %s33_s21 = int_to_ptr.vmem [resolvable:$true] %s32_s21 }
   0x7   :  { %p1311_p1 = scmp.lt.u32.totalorder %s1307_s24, %s1605_s1 }
   0x9   :  { %p1313_p2 = pnand %p1311_p1, %p1308_p0 }
   0xb   :  { %1316 = shalt.err (!%p1313_p2)
}
   0xc   :  { %s1317_s4 = scalar_lea.vmem %s33_s21, 24576  ;;  %p1322_p4 = scmp.lt.s32.totalorder %s33_s21, %s33_s21 }
   0xd   :  { %p1318_p3 = scmp.ne.s32.totalorder %s33_s21, %s1317_s4  ;;  %p1323_p5 = scmp.lt.s32.totalorder %s1317_s4, %s1317_s4 }
   0xf   :  { %p1324_p6 = por %p1323_p5, %p1322_p4 }
  0x11   :  { %p1325_p7 = pnand %p1324_p6, %p1318_p3 }
  0x13   :  { %1328 = shalt.err (!%p1325_p7)
}
  0x14   :  { %s1402_s29 = smov 256   ;;  %s1403_s30 = smov 16  }
  0x15   :  { %38 = dma.hbm_to_vmem [thread:$0]  %s1605_s1, 24576, %s33_s21, [#allocation7], %s1402_s29, %s1402_s29, %s1403_s30  }
  0x16   :  { %s1404_s8 = smov [#allocation3]   ;;  %s1329_s12 = scalar_lea.hbm %s1604_s0, 12288 }
  0x17   :  { %s20_s9 = sshll.u32 %s1404_s8, 4  ;;  %p1330_p8 = scmp.ne.s32.totalorder %s1604_s0, %s1329_s12  ;;  %s21_s9 = int_to_ptr.vmem [resolvable:$true] %s20_s9 }
  0x18   :  { %p1333_p9 = scmp.lt.u32.totalorder %s1329_s12, %s1604_s0 }
  0x1a   :  { %p1335_p10 = pnand %p1333_p9, %p1330_p8 }
  0x1c   :  { %1338 = shalt.err (!%p1335_p10)
}
  0x1d   :  { %s1339_s17 = scalar_lea.vmem %s21_s9, 12288  ;;  %p1344_p12 = scmp.lt.s32.totalorder %s21_s9, %s21_s9 }
  0x1e   :  { %p1340_p11 = scmp.ne.s32.totalorder %s21_s9, %s1339_s17  ;;  %p1345_p13 = scmp.lt.s32.totalorder %s1339_s17, %s1339_s17 }
  0x20   :  { %p1346_p0 = por %p1345_p13, %p1344_p12 }
  0x22   :  { %p1347_p1 = pnand %p1346_p0, %p1340_p11 }
  0x24   :  { %1350 = shalt.err (!%p1347_p1)
}
  0x25   :  { %s1405_s1 = smov 768   ;;  %s1406_s18 = smov 48  }
  0x26   :  { %26 = dma.hbm_to_vmem [thread:$0]  %s1604_s0, 12288, %s21_s9, [#allocation4], %s1405_s1, %s1405_s1, %s1406_s18  }
  0x27   :  { %s1407_s21 = smov [#allocation8]   ;;  %s1351_s25 = scalar_lea.hbm %s1607_s3, 256 }
  0x28   :  { %s47_s22 = sshll.u32 %s1407_s21, 4  ;;  %p1352_p2 = scmp.ne.s32.totalorder %s1607_s3, %s1351_s25  ;;  %s48_s22 = int_to_ptr.vmem [resolvable:$true] %s47_s22 }
  0x29   :  { %p1355_p3 = scmp.lt.u32.totalorder %s1351_s25, %s1607_s3 }
  0x2b   :  { %p1357_p4 = pnand %p1355_p3, %p1352_p2 }
  0x2d   :  { %1360 = shalt.err (!%p1357_p4)
}
  0x2e   :  { %s1361_s29 = scalar_lea.vmem %s48_s22, 256  ;;  %p1366_p6 = scmp.lt.s32.totalorder %s48_s22, %s48_s22 }
  0x2f   :  { %p1362_p5 = scmp.ne.s32.totalorder %s48_s22, %s1361_s29  ;;  %p1367_p7 = scmp.lt.s32.totalorder %s1361_s29, %s1361_s29 }
  0x31   :  { %p1368_p8 = por %p1367_p7, %p1366_p6 }
  0x33   :  { %p1369_p9 = pnand %p1368_p8, %p1362_p5 }
  0x35   :  { %1372 = shalt.err (!%p1369_p9)
}
  0x36   :  { %50 = dma.hbm_to_vmem [thread:$0]  %s1607_s3, 256, %s48_s22, [#allocation7]  }
  0x37   :  { %1395 = dma.done.wait [#allocation4], 12288  }
  0x38   :  { %1396 = vsyncadd [#allocation4], 4294955008 }
  0x39   :  { %1397 = dma.done.wait [#allocation7], 24832  }
  0x3a   :  { %1398 = vsyncadd [#allocation7], 4294942464  ;;  %v223_v1 = vld [vmem:[#allocation6 + $0x208] sm:$0xff]  ;;  %v225_v2 = vld [vmem:[#allocation6 + $0x218] sm:$0xff] }
  0x3b   :  { %v222_v3 = vld [vmem:[#allocation6 + $0x200] sm:$0xff]  ;;  %v1041_v4 = vpack.c.bf16 %v225_v2, %v223_v1  ;;  %v224_v5 = vld [vmem:[#allocation6 + $0x210] sm:$0xff]  ;;  %v227_v6 = vld [vmem:[#allocation6 + $0x228] sm:$0xff] }
  0x3c   :  { %v229_v7 = vld [vmem:[#allocation6 + $0x238] sm:$0xff]  ;;  %v1043_v8 = vpack.c.bf16 %v224_v5, %v222_v3  ;;  %v226_v10 = vld [vmem:[#allocation6 + $0x220] sm:$0xff]  ;;  %v228_v11 = vld [vmem:[#allocation6 + $0x230] sm:$0xff] }
  0x3d   :  { %v1045_v9 = vpack.c.bf16 %v229_v7, %v227_v6  ;;  %v231_v12 = vld [vmem:[#allocation6 + $0x248] sm:$0xff]  ;;  %1042 = vmatprep.subr.bf16.mxu0 %v1041_v4  ;;  %v233_v13 = vld [vmem:[#allocation6 + $0x258] sm:$0xff]  ;;  %v1047_v14 = vpack.c.bf16 %v228_v11, %v226_v10  ;;  %v230_v16 = vld [vmem:[#allocation6 + $0x240] sm:$0xff] }
  0x3e   :  { %1044 = vmatpush1.bf16.msra.mxu0 %v1043_v8  ;;  %v1049_v15 = vpack.c.bf16 %v233_v13, %v231_v12  ;;  %v232_v17 = vld [vmem:[#allocation6 + $0x250] sm:$0xff]  ;;  %v235_v18 = vld [vmem:[#allocation6 + $0x268] sm:$0xff]  ;;  %v237_v19 = vld [vmem:[#allocation6 + $0x278] sm:$0xff] }
  0x3f   :  { %1046 = vmatprep.subr.bf16.mxu0 %v1045_v9  ;;  %v1051_v20 = vpack.c.bf16 %v232_v17, %v230_v16  ;;  %v1053_v21 = vpack.c.bf16 %v237_v19, %v235_v18  ;;  %v234_v22 = vld [vmem:[#allocation6 + $0x260] sm:$0xff]  ;;  %v236_v23 = vld [vmem:[#allocation6 + $0x270] sm:$0xff]  ;;  %v239_v24 = vld [vmem:[#allocation6 + $0x288] sm:$0xff] }
  0x40   :  { %v241_v25 = vld [vmem:[#allocation6 + $0x298] sm:$0xff]  ;;  %v1055_v26 = vpack.c.bf16 %v236_v23, %v234_v22  ;;  %v238_v28 = vld [vmem:[#allocation6 + $0x280] sm:$0xff]  ;;  %v240_v29 = vld [vmem:[#allocation6 + $0x290] sm:$0xff] }
  0x41   :  { %v1057_v27 = vpack.c.bf16 %v241_v25, %v239_v24  ;;  %v243_v30 = vld [vmem:[#allocation6 + $0x2a8] sm:$0xff]  ;;  %v245_v31 = vld [vmem:[#allocation6 + $0x2b8] sm:$0xff]  ;;  %v1059_v32 = vpack.c.bf16 %v240_v29, %v238_v28  ;;  %v242_v34 = vld [vmem:[#allocation6 + $0x2a0] sm:$0xff] }
  0x42   :  { %1048 = vmatpush1.bf16.msra.mxu0 %v1047_v14  ;;  %v1061_v33 = vpack.c.bf16 %v245_v31, %v243_v30  ;;  %v244_v35 = vld [vmem:[#allocation6 + $0x2b0] sm:$0xff]  ;;  %v247_v36 = vld [vmem:[#allocation6 + $0x2c8] sm:$0xff]  ;;  %v249_v37 = vld [vmem:[#allocation6 + $0x2d8] sm:$0xff] }
  0x43   :  { %1050 = vmatprep.subr.bf16.mxu0 %v1049_v15  ;;  %v1063_v38 = vpack.c.bf16 %v244_v35, %v242_v34  ;;  %v246_v39 = vld [vmem:[#allocation6 + $0x2c0] sm:$0xff]  ;;  %v248_v40 = vld [vmem:[#allocation6 + $0x2d0] sm:$0xff]  ;;  %v159_v41 = vld [vmem:[#allocation6 + $0x8] sm:$0xff]  ;;  %v1065_v42 = vpack.c.bf16 %v249_v37, %v247_v36 }
  0x44   :  { %v251_v43 = vld [vmem:[#allocation6 + $0x2e8] sm:$0xff]  ;;  %v253_v44 = vld [vmem:[#allocation6 + $0x2f8] sm:$0xff]  ;;  %v158_v47 = vld [vmem:[#allocation6] sm:$0xff]  ;;  %v1067_v51 = vpack.c.bf16 %v248_v40, %v246_v39 }
  0x45   :  { %v161_v45 = vld [vmem:[#allocation6 + $0x18] sm:$0xff]  ;;  %v160_v48 = vld [vmem:[#allocation6 + $0x10] sm:$0xff]  ;;  %v250_v52 = vld [vmem:[#allocation6 + $0x2e0] sm:$0xff]  ;;  %v1069_v55 = vpack.c.bf16 %v253_v44, %v251_v43 }
  0x46   :  { %1052 = vmatpush1.bf16.msra.mxu0 %v1051_v20  ;;  %v977_v46 = vpack.c.bf16 %v161_v45, %v159_v41  ;;  %v65_v49 = vld [vmem:[#allocation3 + $0x18] sm:$0xff]  ;;  %v979_v50 = vpack.c.bf16 %v160_v48, %v158_v47  ;;  %v163_v53 = vld [vmem:[#allocation6 + $0x28] sm:$0xff]  ;;  %v252_v56 = vld [vmem:[#allocation6 + $0x2f0] sm:$0xff] }
  0x47   :  { %1054 = vmatprep.subr.bf16.mxu0 %v1053_v21  ;;  %587 = vmatprep.mubr.f32.mxu0 %v65_v49  ;;  %v165_v54 = vld [vmem:[#allocation6 + $0x38] sm:$0xff]  ;;  %v162_v58 = vld [vmem:[#allocation6 + $0x20] sm:$0xff]  ;;  %v164_v59 = vld [vmem:[#allocation6 + $0x30] sm:$0xff]  ;;  %v1071_v1 = vpack.c.bf16 %v252_v56, %v250_v52 }
  0x48   :  { %978 = vmatprep.subr.bf16.mxu1 %v977_v46  ;;  %v981_v57 = vpack.c.bf16 %v165_v54, %v163_v53  ;;  %v255_v60 = vld [vmem:[#allocation6 + $0x308] sm:$0xff]  ;;  %v257_v61 = vld [vmem:[#allocation6 + $0x318] sm:$0xff]  ;;  %v983_v62 = vpack.c.bf16 %v164_v59, %v162_v58  ;;  %v166_v3 = vld [vmem:[#allocation6 + $0x40] sm:$0xff] }
  0x49   :  { %980 = vmatpush1.bf16.msra.mxu1 %v979_v50  ;;  %v167_v63 = vld [vmem:[#allocation6 + $0x48] sm:$0xff]  ;;  %v169_v0 = vld [vmem:[#allocation6 + $0x58] sm:$0xff]  ;;  %v1073_v4 = vpack.c.bf16 %v257_v61, %v255_v60  ;;  %v254_v5 = vld [vmem:[#allocation6 + $0x300] sm:$0xff] }
  0x4a   :  { %1056 = vmatpush1.bf16.msra.mxu0 %v1055_v26  ;;  %982 = vmatprep.subr.bf16.mxu1 %v981_v57  ;;  %v985_v2 = vpack.c.bf16 %v169_v0, %v167_v63  ;;  %v256_v6 = vld [vmem:[#allocation6 + $0x310] sm:$0xff]  ;;  %v259_v8 = vld [vmem:[#allocation6 + $0x328] sm:$0xff]  ;;  %v261_v9 = vld [vmem:[#allocation6 + $0x338] sm:$0xff] }
  0x4b   :  { %1058 = vmatprep.subr.bf16.mxu0 %v1057_v27  ;;  %v168_v7 = vld [vmem:[#allocation6 + $0x50] sm:$0xff]  ;;  %v171_v11 = vld [vmem:[#allocation6 + $0x68] sm:$0xff]  ;;  %v173_v12 = vld [vmem:[#allocation6 + $0x78] sm:$0xff]  ;;  %v1075_v13 = vpack.c.bf16 %v256_v6, %v254_v5  ;;  %v1077_v17 = vpack.c.bf16 %v261_v9, %v259_v8 }
  0x4c   :  { %v987_v10 = vpack.c.bf16 %v168_v7, %v166_v3  ;;  %v989_v14 = vpack.c.bf16 %v173_v12, %v171_v11  ;;  %v170_v15 = vld [vmem:[#allocation6 + $0x60] sm:$0xff]  ;;  %v172_v16 = vld [vmem:[#allocation6 + $0x70] sm:$0xff]  ;;  %v263_v20 = vld [vmem:[#allocation6 + $0x348] sm:$0xff] }
  0x4d   :  { %984 = vmatpush1.bf16.msra.mxu1 %v983_v62  ;;  %v258_v18 = vld [vmem:[#allocation6 + $0x320] sm:$0xff]  ;;  %v260_v19 = vld [vmem:[#allocation6 + $0x330] sm:$0xff]  ;;  %v991_v21 = vpack.c.bf16 %v172_v16, %v170_v15  ;;  %v265_v22 = vld [vmem:[#allocation6 + $0x358] sm:$0xff] }
  0x4e   :  { %1060 = vmatpush1.bf16.msra.mxu0 %v1059_v32  ;;  %986 = vmatprep.subr.bf16.mxu1 %v985_v2  ;;  %v175_v23 = vld [vmem:[#allocation6 + $0x88] sm:$0xff]  ;;  %v177_v24 = vld [vmem:[#allocation6 + $0x98] sm:$0xff]  ;;  %v174_v26 = vld [vmem:[#allocation6 + $0x80] sm:$0xff]  ;;  %v1079_v28 = vpack.c.bf16 %v260_v19, %v258_v18  ;;  %v1081_v30 = vpack.c.bf16 %v265_v22, %v263_v20 }
  0x4f   :  { %1062 = vmatprep.subr.bf16.mxu0 %v1061_v33  ;;  %v993_v25 = vpack.c.bf16 %v177_v24, %v175_v23  ;;  %v176_v27 = vld [vmem:[#allocation6 + $0x90] sm:$0xff]  ;;  %v262_v29 = vld [vmem:[#allocation6 + $0x340] sm:$0xff]  ;;  %v179_v33 = vld [vmem:[#allocation6 + $0xa8] sm:$0xff] }
  0x50   :  { %v264_v31 = vld [vmem:[#allocation6 + $0x350] sm:$0xff]  ;;  %v995_v32 = vpack.c.bf16 %v176_v27, %v174_v26  ;;  %v181_v34 = vld [vmem:[#allocation6 + $0xb8] sm:$0xff]  ;;  %v267_v35 = vld [vmem:[#allocation6 + $0x368] sm:$0xff] }
  0x51   :  { %988 = vmatpush1.bf16.msra.mxu1 %v987_v10  ;;  %v269_v36 = vld [vmem:[#allocation6 + $0x378] sm:$0xff]  ;;  %v997_v37 = vpack.c.bf16 %v181_v34, %v179_v33  ;;  %v180_v39 = vld [vmem:[#allocation6 + $0xb0] sm:$0xff]  ;;  %v1083_v40 = vpack.c.bf16 %v264_v31, %v262_v29  ;;  %v266_v41 = vld [vmem:[#allocation6 + $0x360] sm:$0xff] }
  0x52   :  { %1064 = vmatpush1.bf16.msra.mxu0 %v1063_v38  ;;  %990 = vmatprep.subr.bf16.mxu1 %v989_v14  ;;  %v178_v38 = vld [vmem:[#allocation6 + $0xa0] sm:$0xff]  ;;  %v1085_v43 = vpack.c.bf16 %v269_v36, %v267_v35  ;;  %v268_v44 = vld [vmem:[#allocation6 + $0x370] sm:$0xff]  ;;  %v271_v45 = vld [vmem:[#allocation6 + $0x388] sm:$0xff] }
  0x53   :  { %1066 = vmatprep.subr.bf16.mxu0 %v1065_v42  ;;  %v183_v42 = vld [vmem:[#allocation6 + $0xc8] sm:$0xff]  ;;  %v999_v46 = vpack.c.bf16 %v180_v39, %v178_v38  ;;  %v185_v47 = vld [vmem:[#allocation6 + $0xd8] sm:$0xff]  ;;  %v182_v50 = vld [vmem:[#allocation6 + $0xc0] sm:$0xff]  ;;  %v1087_v52 = vpack.c.bf16 %v268_v44, %v266_v41 }
  0x54   :  { %v273_v48 = vld [vmem:[#allocation6 + $0x398] sm:$0xff]  ;;  %v1001_v49 = vpack.c.bf16 %v185_v47, %v183_v42  ;;  %v187_v53 = vld [vmem:[#allocation6 + $0xe8] sm:$0xff]  ;;  %v270_v56 = vld [vmem:[#allocation6 + $0x380] sm:$0xff] }
  0x55   :  { %992 = vmatpush1.bf16.msra.mxu1 %v991_v21  ;;  %v189_v54 = vld [vmem:[#allocation6 + $0xf8] sm:$0xff]  ;;  %v272_v57 = vld [vmem:[#allocation6 + $0x390] sm:$0xff]  ;;  %v275_v58 = vld [vmem:[#allocation6 + $0x3a8] sm:$0xff] }
  0x56   :  { %1068 = vmatpush1.bf16.msra.mxu0 %v1067_v51  ;;  %994 = vmatprep.subr.bf16.mxu1 %v993_v25  ;;  %v184_v51 = vld [vmem:[#allocation6 + $0xd0] sm:$0xff]  ;;  %v277_v60 = vld [vmem:[#allocation6 + $0x3b8] sm:$0xff]  ;;  %v1005_v61 = vpack.c.bf16 %v189_v54, %v187_v53  ;;  %v186_v62 = vld [vmem:[#allocation6 + $0xe0] sm:$0xff]  ;;  %v1091_v2 = vpack.c.bf16 %v272_v57, %v270_v56 }
  0x57   :  { %1070 = vmatprep.subr.bf16.mxu0 %v1069_v55  ;;  %v1089_v55 = vpack.c.bf16 %v273_v48, %v271_v45  ;;  %v1003_v59 = vpack.c.bf16 %v184_v51, %v182_v50  ;;  %v188_v63 = vld [vmem:[#allocation6 + $0xf0] sm:$0xff]  ;;  %v191_v0 = vld [vmem:[#allocation6 + $0x108] sm:$0xff]  ;;  %v1093_v3 = vpack.c.bf16 %v277_v60, %v275_v58  ;;  %v281_v8 = vld [vmem:[#allocation6 + $0x3d8] sm:$0xff] }
  0x58   :  { %v276_v5 = vld [vmem:[#allocation6 + $0x3b0] sm:$0xff]  ;;  %v279_v6 = vld [vmem:[#allocation6 + $0x3c8] sm:$0xff]  ;;  %v1007_v7 = vpack.c.bf16 %v188_v63, %v186_v62  ;;  %v190_v10 = vld [vmem:[#allocation6 + $0x100] sm:$0xff] }
  0x59   :  { %996 = vmatpush1.bf16.msra.mxu1 %v995_v32  ;;  %v192_v11 = vld [vmem:[#allocation6 + $0x110] sm:$0xff]  ;;  %v195_v12 = vld [vmem:[#allocation6 + $0x128] sm:$0xff]  ;;  %v1097_v15 = vpack.c.bf16 %v281_v8, %v279_v6  ;;  %v278_v16 = vld [vmem:[#allocation6 + $0x3c0] sm:$0xff] }
  0x5a   :  { %1072 = vmatpush1.bf16.msra.mxu0 %v1071_v1  ;;  %998 = vmatprep.subr.bf16.mxu1 %v997_v37  ;;  %v193_v1 = vld [vmem:[#allocation6 + $0x118] sm:$0xff]  ;;  %v283_v18 = vld [vmem:[#allocation6 + $0x3e8] sm:$0xff]  ;;  %v1011_v19 = vpack.c.bf16 %v192_v11, %v190_v10  ;;  %v194_v22 = vld [vmem:[#allocation6 + $0x120] sm:$0xff] }
  0x5b   :  { %1074 = vmatprep.subr.bf16.mxu0 %v1073_v4  ;;  %v274_v4 = vld [vmem:[#allocation6 + $0x3a0] sm:$0xff]  ;;  %v1009_v9 = vpack.c.bf16 %v193_v1, %v191_v0  ;;  %v285_v20 = vld [vmem:[#allocation6 + $0x3f8] sm:$0xff]  ;;  %v196_v23 = vld [vmem:[#allocation6 + $0x130] sm:$0xff] }
  0x5c   :  { %v1095_v14 = vpack.c.bf16 %v276_v5, %v274_v4  ;;  %v199_v24 = vld [vmem:[#allocation6 + $0x148] sm:$0xff]  ;;  %v201_v25 = vld [vmem:[#allocation6 + $0x158] sm:$0xff]  ;;  %v1101_v27 = vpack.c.bf16 %v285_v20, %v283_v18  ;;  %v284_v29 = vld [vmem:[#allocation6 + $0x3f0] sm:$0xff]  ;;  %v1015_v31 = vpack.c.bf16 %v196_v23, %v194_v22 }
  0x5d   :  { %1000 = vmatpush1.bf16.msra.mxu1 %v999_v46  ;;  %v289_v32 = vld [vmem:[#allocation6 + $0x418] sm:$0xff]  ;;  %v1017_v33 = vpack.c.bf16 %v201_v25, %v199_v24  ;;  %v198_v34 = vld [vmem:[#allocation6 + $0x140] sm:$0xff]  ;;  %v200_v35 = vld [vmem:[#allocation6 + $0x150] sm:$0xff] }
  0x5e   :  { %1076 = vmatpush1.bf16.msra.mxu0 %v1075_v13  ;;  %1002 = vmatprep.subr.bf16.mxu1 %v1001_v49  ;;  %v197_v13 = vld [vmem:[#allocation6 + $0x138] sm:$0xff]  ;;  %v203_v36 = vld [vmem:[#allocation6 + $0x168] sm:$0xff]  ;;  %v288_v41 = vld [vmem:[#allocation6 + $0x410] sm:$0xff] }
  0x5f   :  { %1078 = vmatprep.subr.bf16.mxu0 %v1077_v17  ;;  %v280_v17 = vld [vmem:[#allocation6 + $0x3d0] sm:$0xff]  ;;  %v1013_v21 = vpack.c.bf16 %v197_v13, %v195_v12  ;;  %v205_v37 = vld [vmem:[#allocation6 + $0x178] sm:$0xff]  ;;  %v291_v42 = vld [vmem:[#allocation6 + $0x428] sm:$0xff] }
  0x60   :  { %v1099_v26 = vpack.c.bf16 %v280_v17, %v278_v16  ;;  %v293_v44 = vld [vmem:[#allocation6 + $0x438] sm:$0xff]  ;;  %v1021_v45 = vpack.c.bf16 %v205_v37, %v203_v36  ;;  %v202_v46 = vld [vmem:[#allocation6 + $0x160] sm:$0xff]  ;;  %v204_v47 = vld [vmem:[#allocation6 + $0x170] sm:$0xff] }
  0x61   :  { %1004 = vmatpush1.bf16.msra.mxu1 %v1003_v59  ;;  %v207_v48 = vld [vmem:[#allocation6 + $0x188] sm:$0xff]  ;;  %v209_v49 = vld [vmem:[#allocation6 + $0x198] sm:$0xff]  ;;  %v64_v50 = vld [vmem:[#allocation3 + $0x10] sm:$0xff]  ;;  %v1109_v53 = vpack.c.bf16 %v293_v44, %v291_v42  ;;  %v1023_v57 = vpack.c.bf16 %v204_v47, %v202_v46 }
  0x62   :  { %1080 = vmatpush1.bf16.msra.mxu0 %v1079_v28  ;;  %1006 = vmatprep.subr.bf16.mxu1 %v1005_v61  ;;  %v282_v28 = vld [vmem:[#allocation6 + $0x3e0] sm:$0xff]  ;;  %v295_v56 = vld [vmem:[#allocation6 + $0x448] sm:$0xff]  ;;  %v297_v58 = vld [vmem:[#allocation6 + $0x458] sm:$0xff]  ;;  %v1025_v59 = vpack.c.bf16 %v209_v49, %v207_v48 }
  0x63   :  { %1082 = vmatprep.subr.bf16.mxu0 %v1081_v30  ;;  %v287_v30 = vld [vmem:[#allocation6 + $0x408] sm:$0xff]  ;;  %v1103_v38 = vpack.c.bf16 %v284_v29, %v282_v28  ;;  %v290_v54 = vld [vmem:[#allocation6 + $0x420] sm:$0xff]  ;;  %v208_v61 = vld [vmem:[#allocation6 + $0x190] sm:$0xff] }
  0x64   :  { %v1105_v39 = vpack.c.bf16 %v289_v32, %v287_v30  ;;  %v206_v60 = vld [vmem:[#allocation6 + $0x180] sm:$0xff]  ;;  %v211_v62 = vld [vmem:[#allocation6 + $0x1a8] sm:$0xff]  ;;  %v213_v63 = vld [vmem:[#allocation6 + $0x1b8] sm:$0xff] }
  0x65   :  { %1008 = vmatpush1.bf16.msra.mxu1 %v1007_v7  ;;  %v70_v0 = vld [vmem:[#allocation3 + $0x40] sm:$0xff]  ;;  %v296_v5 = vld [vmem:[#allocation6 + $0x450] sm:$0xff]  ;;  %v299_v6 = vld [vmem:[#allocation6 + $0x468] sm:$0xff]  ;;  %v1027_v7 = vpack.c.bf16 %v208_v61, %v206_v60 }
  0x66   :  { %1084 = vmatpush1.bf16.msra.mxu0 %v1083_v40  ;;  %1010 = vmatprep.subr.bf16.mxu1 %v1009_v9  ;;  %v286_v40 = vld [vmem:[#allocation6 + $0x400] sm:$0xff]  ;;  %v301_v8 = vld [vmem:[#allocation6 + $0x478] sm:$0xff]  ;;  %v1029_v9 = vpack.c.bf16 %v213_v63, %v211_v62  ;;  %v212_v11 = vld [vmem:[#allocation6 + $0x1b0] sm:$0xff] }
  0x67   :  { %1086 = vmatprep.subr.bf16.mxu0 %v1085_v43  ;;  %v1019_v43 = vpack.c.bf16 %v200_v35, %v198_v34  ;;  %v1107_v51 = vpack.c.bf16 %v288_v41, %v286_v40  ;;  %v294_v4 = vld [vmem:[#allocation6 + $0x440] sm:$0xff]  ;;  %v215_v12 = vld [vmem:[#allocation6 + $0x1c8] sm:$0xff]  ;;  %v217_v13 = vld [vmem:[#allocation6 + $0x1d8] sm:$0xff]  ;;  %v1117_v18 = vpack.c.bf16 %v301_v8, %v299_v6 }
  0x68   :  { %v210_v10 = vld [vmem:[#allocation6 + $0x1a0] sm:$0xff]  ;;  %v83_v16 = vld [vmem:[#allocation3 + $0xa8] sm:$0xff]  ;;  %v305_v23 = vld [vmem:[#allocation6 + $0x498] sm:$0xff]  ;;  %v1033_v24 = vpack.c.bf16 %v217_v13, %v215_v12 }
  0x69   :  { %1012 = vmatpush1.bf16.msra.mxu1 %v1011_v19  ;;  %v298_v17 = vld [vmem:[#allocation6 + $0x460] sm:$0xff]  ;;  %v300_v19 = vld [vmem:[#allocation6 + $0x470] sm:$0xff]  ;;  %v303_v20 = vld [vmem:[#allocation6 + $0x488] sm:$0xff] }
  0x6a   :  { %1088 = vmatpush1.bf16.msra.mxu0 %v1087_v52  ;;  %1014 = vmatprep.subr.bf16.mxu1 %v1013_v21  ;;  %v71_v52 = vld [vmem:[#allocation3 + $0x48] sm:$0xff]  ;;  %v1031_v21 = vpack.c.bf16 %v212_v11, %v210_v10  ;;  %v214_v25 = vld [vmem:[#allocation6 + $0x1c0] sm:$0xff]  ;;  %v221_v28 = vld [vmem:[#allocation6 + $0x1f8] sm:$0xff]  ;;  %v1119_v30 = vpack.c.bf16 %v300_v19, %v298_v17  ;;  %v1121_v32 = vpack.c.bf16 %v305_v23, %v303_v20 }
  0x6b   :  { %1090 = vmatprep.subr.bf16.mxu0 %v1089_v55  ;;  %v292_v55 = vld [vmem:[#allocation6 + $0x430] sm:$0xff]  ;;  %v63_v22 = vld [vmem:[#allocation3 + $0x8] sm:$0xff]  ;;  %v82_v29 = vld [vmem:[#allocation3 + $0xa0] sm:$0xff] }
  0x6c   :  { %v1111_v1 = vpack.c.bf16 %v292_v55, %v290_v54  ;;  %426 = vmatprep.mubr.f32.mxu1 %v63_v22  ;;  %v304_v34 = vld [vmem:[#allocation6 + $0x490] sm:$0xff]  ;;  %v307_v35 = vld [vmem:[#allocation6 + $0x4a8] sm:$0xff]  ;;  %v309_v37 = vld [vmem:[#allocation6 + $0x4b8] sm:$0xff] }
  0x6d   :  { %1016 = vmatpush1.bf16.msra.mxu1 %v1015_v31  ;;  %v89_v31 = vld [vmem:[#allocation3 + $0xd8] sm:$0xff]  ;;  %v220_v40 = vld [vmem:[#allocation6 + $0x1f0] sm:$0xff]  ;;  %v1125_v44 = vpack.c.bf16 %v309_v37, %v307_v35  ;;  %v311_v48 = vld [vmem:[#allocation6 + $0x4c8] sm:$0xff] }
  0x6e   :  { %1092 = vmatpush1.bf16.msra.mxu0 %v1091_v2  ;;  %1018 = vmatprep.subr.bf16.mxu1 %v1017_v33  ;;  %v77_v2 = vld [vmem:[#allocation3 + $0x78] sm:$0xff]  ;;  %v302_v33 = vld [vmem:[#allocation6 + $0x480] sm:$0xff]  ;;  %v88_v41 = vld [vmem:[#allocation3 + $0xd0] sm:$0xff] }
  0x6f   :  { %1094 = vmatprep.subr.bf16.mxu0 %v1093_v3  ;;  %v1113_v3 = vpack.c.bf16 %v297_v58, %v295_v56  ;;  %v1123_v42 = vpack.c.bf16 %v304_v34, %v302_v33  ;;  %v308_v46 = vld [vmem:[#allocation6 + $0x4b0] sm:$0xff]  ;;  %v313_v49 = vld [vmem:[#allocation6 + $0x4d8] sm:$0xff]  ;;  %v310_v54 = vld [vmem:[#allocation6 + $0x4c0] sm:$0xff] }
  0x70   :  { %v312_v55 = vld [vmem:[#allocation6 + $0x4d0] sm:$0xff]  ;;  %v315_v56 = vld [vmem:[#allocation6 + $0x4e8] sm:$0xff]  ;;  %v62_v58 = vld [vmem:[#allocation3] sm:$0xff] }
  0x71   :  { %1020 = vmatpush1.bf16.msra.mxu1 %v1019_v43  ;;  %v95_v43 = vld [vmem:[#allocation3 + $0x108] sm:$0xff]  ;;  %v100_v60 = vld [vmem:[#allocation3 + $0x130] sm:$0xff]  ;;  %v1131_v61 = vpack.c.bf16 %v312_v55, %v310_v54  ;;  %v106_v6 = vld [vmem:[#allocation3 + $0x160] sm:$0xff] }
  0x72   :  { %1096 = vmatpush1.bf16.msra.mxu0 %v1095_v14  ;;  %1022 = vmatprep.subr.bf16.mxu1 %v1021_v45  ;;  %v76_v14 = vld [vmem:[#allocation3 + $0x70] sm:$0xff]  ;;  %v306_v45 = vld [vmem:[#allocation6 + $0x4a0] sm:$0xff]  ;;  %v107_v62 = vld [vmem:[#allocation3 + $0x168] sm:$0xff] }
  0x73   :  { %1098 = vmatprep.subr.bf16.mxu0 %v1097_v15  ;;  %v1115_v15 = vpack.c.bf16 %v296_v5, %v294_v4  ;;  %v68_v4 = vld [vmem:[#allocation3 + $0x30] sm:$0xff]  ;;  %v75_v5 = vld [vmem:[#allocation3 + $0x68] sm:$0xff]  ;;  %v113_v8 = vld [vmem:[#allocation3 + $0x198] sm:$0xff] }
  0x74   :  { %v318_v10 = vld [vmem:[#allocation6 + $0x500] sm:$0xff]  ;;  %v320_v11 = vld [vmem:[#allocation6 + $0x510] sm:$0xff]  ;;  %v323_v12 = vld [vmem:[#allocation6 + $0x528] sm:$0xff] }
  0x75   :  { %1024 = vmatpush1.bf16.msra.mxu1 %v1023_v57  ;;  %v317_v57 = vld [vmem:[#allocation6 + $0x4f8] sm:$0xff]  ;;  %v1139_v17 = vpack.c.bf16 %v320_v11, %v318_v10  ;;  %v322_v20 = vld [vmem:[#allocation6 + $0x520] sm:$0xff]  ;;  %v327_v22 = vld [vmem:[#allocation6 + $0x548] sm:$0xff] }
  0x76   :  { %1100 = vmatpush1.bf16.msra.mxu0 %v1099_v26  ;;  %1026 = vmatprep.subr.bf16.mxu1 %v1025_v59  ;;  %v216_v26 = vld [vmem:[#allocation6 + $0x1d0] sm:$0xff]  ;;  %v69_v59 = vld [vmem:[#allocation3 + $0x38] sm:$0xff]  ;;  %v1133_v63 = vpack.c.bf16 %v317_v57, %v315_v56  ;;  %v86_v34 = vld [vmem:[#allocation3 + $0xc0] sm:$0xff] }
  0x77   :  { %1102 = vmatprep.subr.bf16.mxu0 %v1101_v27  ;;  %v219_v27 = vld [vmem:[#allocation6 + $0x1e8] sm:$0xff]  ;;  %v1035_v36 = vpack.c.bf16 %v216_v26, %v214_v25  ;;  %v325_v13 = vld [vmem:[#allocation6 + $0x538] sm:$0xff]  ;;  %v118_v26 = vld [vmem:[#allocation3 + $0x1c0] sm:$0xff] }
  0x78   :  { %v1141_v19 = vpack.c.bf16 %v325_v13, %v323_v12  ;;  %v329_v23 = vld [vmem:[#allocation6 + $0x558] sm:$0xff]  ;;  %v87_v25 = vld [vmem:[#allocation3 + $0xc8] sm:$0xff]  ;;  %v98_v54 = vld [vmem:[#allocation3 + $0x120] sm:$0xff] }
  0x79   :  { %1028 = vmatpush1.bf16.msra.mxu1 %v1027_v7  ;;  %v333_v33 = vld [vmem:[#allocation6 + $0x578] sm:$0xff]  ;;  %v136_v56 = vld [vmem:[#allocation3 + $0x250] sm:$0xff]  ;;  %v110_v10 = vld [vmem:[#allocation3 + $0x180] sm:$0xff] }
  0x7a   :  { %1104 = vmatpush1.bf16.msra.mxu0 %v1103_v38  ;;  %1030 = vmatprep.subr.bf16.mxu1 %v1029_v9  ;;  %v1037_v38 = vpack.c.bf16 %v221_v28, %v219_v27  ;;  %v125_v28 = vld [vmem:[#allocation3 + $0x1f8] sm:$0xff]  ;;  %v148_v12 = vld [vmem:[#allocation3 + $0x2b0] sm:$0xff] }
  0x7b   :  { %1106 = vmatprep.subr.bf16.mxu0 %v1105_v39  ;;  %v218_v39 = vld [vmem:[#allocation6 + $0x1e0] sm:$0xff]  ;;  %v93_v35 = vld [vmem:[#allocation3 + $0xf8] sm:$0xff] }
  0x7c   :  { %v1039_v47 = vpack.c.bf16 %v220_v40, %v218_v39  ;;  %v330_v40 = vld [vmem:[#allocation6 + $0x560] sm:$0xff]  ;;  %v105_v55 = vld [vmem:[#allocation3 + $0x158] sm:$0xff] }
  0x7d   :  { %588 = vmatmul.mubr.f32.vlgmr.msra.gmra.mrb[0].mxu0 %v64_v50  ;;  %1032 = vmatpush1.bf16.msra.mxu1 %v1031_v21  ;;  %v94_v50 = vld [vmem:[#allocation3 + $0x100] sm:$0xff]  ;;  %v324_v21 = vld [vmem:[#allocation6 + $0x530] sm:$0xff]  ;;  %v117_v11 = vld [vmem:[#allocation3 + $0x1b8] sm:$0xff] }
  0x7e   :  { %1108 = vmatpush1.bf16.msra.mxu0 %v1107_v51  ;;  %593 = vmatprep.mubr.f32.mxu0 %v71_v52  ;;  %v1127_v51 = vpack.c.bf16 %v308_v46, %v306_v45  ;;  %v101_v52 = vld [vmem:[#allocation3 + $0x138] sm:$0xff]  ;;  %v1143_v27 = vpack.c.bf16 %v324_v21, %v322_v20  ;;  %v99_v45 = vld [vmem:[#allocation3 + $0x128] sm:$0xff]  ;;  %v130_v46 = vld [vmem:[#allocation3 + $0x220] sm:$0xff] }
  0x7f   :  { %1110 = vmatprep.subr.bf16.mxu0 %v1109_v53  ;;  %1034 = vmatprep.subr.bf16.mxu1 %v1033_v24  ;;  %v1129_v53 = vpack.c.bf16 %v313_v49, %v311_v48  ;;  %v80_v24 = vld [vmem:[#allocation3 + $0x90] sm:$0xff]  ;;  %v137_v48 = vld [vmem:[#allocation3 + $0x258] sm:$0xff]  ;;  %v154_v20 = vld [vmem:[#allocation3 + $0x2e0] sm:$0xff] }
  0x81   :  { %594 = vmatmul.mubr.f32.gmra.mrb[2].mxu0 %v70_v0  ;;  %1036 = vmatpush1.bf16.msra.mxu1 %v1035_v36  ;;  %v314_v0 = vld [vmem:[#allocation6 + $0x4e0] sm:$0xff]  ;;  %v124_v36 = vld [vmem:[#allocation3 + $0x1f0] sm:$0xff] }
  0x82   :  { %1112 = vmatpush1.bf16.msra.mxu0 %v1111_v1  ;;  %599 = vmatprep.mubr.f32.mxu0 %v77_v2  ;;  %v316_v1 = vld [vmem:[#allocation6 + $0x4f0] sm:$0xff]  ;;  %v319_v2 = vld [vmem:[#allocation6 + $0x508] sm:$0xff] }
  0x83   :  { %1114 = vmatprep.subr.bf16.mxu0 %v1113_v3  ;;  %1038 = vmatprep.subr.bf16.mxu1 %v1037_v38  ;;  %v321_v3 = vld [vmem:[#allocation6 + $0x518] sm:$0xff]  ;;  %v1135_v7 = vpack.c.bf16 %v316_v1, %v314_v0  ;;  %v131_v38 = vld [vmem:[#allocation3 + $0x228] sm:$0xff]  ;;  %v104_v0 = vld [vmem:[#allocation3 + $0x150] sm:$0xff] }
  0x84   :  { %v1137_v9 = vpack.c.bf16 %v321_v3, %v319_v2  ;;  %v111_v1 = vld [vmem:[#allocation3 + $0x188] sm:$0xff]  ;;  %v142_v2 = vld [vmem:[#allocation3 + $0x280] sm:$0xff] }
  0x85   :  { %600 = vmatmul.mubr.f32.gmra.mrb[4].mxu0 %v76_v14  ;;  %1040 = vmatpush1.bf16.msra.mxu1 %v1039_v47  ;;  %v74_v14 = vld [vmem:[#allocation3 + $0x60] sm:$0xff] }
  0x86   :  { %1116 = vmatpush1.bf16.msra.mxu0 %v1115_v15  ;;  %605 = vmatprep.mubr.f32.mxu0 %v83_v16  ;;  %v81_v15 = vld [vmem:[#allocation3 + $0x98] sm:$0xff]  ;;  %v112_v16 = vld [vmem:[#allocation3 + $0x190] sm:$0xff] }
  0x87   :  { %1118 = vmatprep.subr.bf16.mxu0 %v1117_v18  ;;  %v119_v18 = vld [vmem:[#allocation3 + $0x1c8] sm:$0xff] }
  0x88   :  { %427 = vmatmul.mubr.f32.vlgmr.msra.gmra.mrb[0].mxu1 %v62_v58  ;;  %v143_v58 = vld [vmem:[#allocation3 + $0x288] sm:$0xff] }
  0x89   :  { %606 = vmatmul.mubr.f32.gmra.mrb[6].mxu0 %v82_v29  ;;  %432 = vmatprep.mubr.f32.mxu1 %v69_v59  ;;  %v1145_v29 = vpack.c.bf16 %v329_v23, %v327_v22  ;;  %v67_v22 = vld [vmem:[#allocation3 + $0x28] sm:$0xff]  ;;  %v122_v23 = vld [vmem:[#allocation3 + $0x1e0] sm:$0xff] }
  0x8a   :  { %1120 = vmatpush1.bf16.msra.mxu0 %v1119_v30  ;;  %611 = vmatprep.mubr.f32.mxu0 %v89_v31  ;;  %v326_v30 = vld [vmem:[#allocation6 + $0x540] sm:$0xff]  ;;  %v328_v31 = vld [vmem:[#allocation6 + $0x550] sm:$0xff] }
  0x8b   :  { %1122 = vmatprep.subr.bf16.mxu0 %v1121_v32  ;;  %v331_v32 = vld [vmem:[#allocation6 + $0x568] sm:$0xff]  ;;  %v1147_v37 = vpack.c.bf16 %v328_v31, %v326_v30  ;;  %v134_v31 = vld [vmem:[#allocation3 + $0x240] sm:$0xff] }
  0x8c   :  { %433 = vmatmul.mubr.f32.gmra.mrb[2].mxu1 %v68_v4  ;;  %v1149_v39 = vpack.c.bf16 %v333_v33, %v331_v32  ;;  %v149_v4 = vld [vmem:[#allocation3 + $0x2b8] sm:$0xff]  ;;  %v79_v30 = vld [vmem:[#allocation3 + $0x88] sm:$0xff]  ;;  %v78_v33 = vld [vmem:[#allocation3 + $0x80] sm:$0xff] }
  0x8d   :  { %612 = vmatmul.mubr.f32.gmra.mrb[8].mxu0 %v88_v41  ;;  %438 = vmatprep.mubr.f32.mxu1 %v75_v5  ;;  %v332_v41 = vld [vmem:[#allocation6 + $0x570] sm:$0xff]  ;;  %v141_v32 = vld [vmem:[#allocation3 + $0x278] sm:$0xff] }
  0x8e   :  { %1124 = vmatpush1.bf16.msra.mxu0 %v1123_v42  ;;  %617 = vmatprep.mubr.f32.mxu0 %v95_v43  ;;  %v335_v42 = vld [vmem:[#allocation6 + $0x588] sm:$0xff]  ;;  %v337_v43 = vld [vmem:[#allocation6 + $0x598] sm:$0xff]  ;;  %v1151_v47 = vpack.c.bf16 %v332_v41, %v330_v40  ;;  %v90_v41 = vld [vmem:[#allocation3 + $0xe0] sm:$0xff] }
  0x8f   :  { %1126 = vmatprep.subr.bf16.mxu0 %v1125_v44  ;;  %v92_v44 = vld [vmem:[#allocation3 + $0xf0] sm:$0xff]  ;;  %v1153_v49 = vpack.c.bf16 %v337_v43, %v335_v42  ;;  %v153_v40 = vld [vmem:[#allocation3 + $0x2d8] sm:$0xff] }
  0x90   :  { %439 = vmatmul.mubr.f32.gmra.mrb[4].mxu1 %v74_v14  ;;  %v155_v14 = vld [vmem:[#allocation3 + $0x2e8] sm:$0xff]  ;;  %v97_v42 = vld [vmem:[#allocation3 + $0x118] sm:$0xff]  ;;  %v152_v43 = vld [vmem:[#allocation3 + $0x2d0] sm:$0xff] }
  0x91   :  { %618 = vmatmul.mubr.f32.gmra.mrb[10].mxu0 %v94_v50  ;;  %444 = vmatprep.mubr.f32.mxu1 %v81_v15  ;;  %v334_v50 = vld [vmem:[#allocation6 + $0x580] sm:$0xff] }
  0x92   :  { %1128 = vmatpush1.bf16.msra.mxu0 %v1127_v51  ;;  %623 = vmatprep.mubr.f32.mxu0 %v101_v52  ;;  %v336_v51 = vld [vmem:[#allocation6 + $0x590] sm:$0xff]  ;;  %v339_v52 = vld [vmem:[#allocation6 + $0x5a8] sm:$0xff] }
  0x93   :  { %1130 = vmatprep.subr.bf16.mxu0 %v1129_v53  ;;  %v341_v53 = vld [vmem:[#allocation6 + $0x5b8] sm:$0xff]  ;;  %v1155_v57 = vpack.c.bf16 %v336_v51, %v334_v50  ;;  %v114_v50 = vld [vmem:[#allocation3 + $0x1a0] sm:$0xff] }
  0x94   :  { %445 = vmatmul.mubr.f32.gmra.mrb[6].mxu1 %v80_v24  ;;  %v1157_v59 = vpack.c.bf16 %v341_v53, %v339_v52  ;;  %v129_v24 = vld [vmem:[#allocation3 + $0x218] sm:$0xff]  ;;  %v120_v52 = vld [vmem:[#allocation3 + $0x1d0] sm:$0xff]  ;;  %v127_v53 = vld [vmem:[#allocation3 + $0x208] sm:$0xff] }
  0x95   :  { %624 = vmatmul.mubr.f32.gmra.mrb[12].mxu0 %v100_v60  ;;  %450 = vmatprep.mubr.f32.mxu1 %v87_v25  ;;  %v338_v60 = vld [vmem:[#allocation6 + $0x5a0] sm:$0xff]  ;;  %v121_v51 = vld [vmem:[#allocation3 + $0x1d8] sm:$0xff] }
  0x96   :  { %1132 = vmatpush1.bf16.msra.mxu0 %v1131_v61  ;;  %629 = vmatprep.mubr.f32.mxu0 %v107_v62  ;;  %v340_v61 = vld [vmem:[#allocation6 + $0x5b0] sm:$0xff]  ;;  %v343_v62 = vld [vmem:[#allocation6 + $0x5c8] sm:$0xff]  ;;  %v66_v25 = vld [vmem:[#allocation3 + $0x20] sm:$0xff] }
  0x97   :  { %1134 = vmatprep.subr.bf16.mxu0 %v1133_v63  ;;  %v345_v63 = vld [vmem:[#allocation6 + $0x5d8] sm:$0xff]  ;;  %v1159_v3 = vpack.c.bf16 %v340_v61, %v338_v60  ;;  %v144_v60 = vld [vmem:[#allocation3 + $0x290] sm:$0xff]  ;;  %v151_v61 = vld [vmem:[#allocation3 + $0x2c8] sm:$0xff] }
  0x98   :  { %451 = vmatmul.mubr.f32.gmra.mrb[8].mxu1 %v86_v34  ;;  %v1161_v5 = vpack.c.bf16 %v345_v63, %v343_v62  ;;  %v85_v34 = vld [vmem:[#allocation3 + $0xb8] sm:$0xff]  ;;  %v150_v62 = vld [vmem:[#allocation3 + $0x2c0] sm:$0xff] }
  0x99   :  { %630 = vmatmul.mubr.f32.gmra.mrb[14].mxu0 %v106_v6  ;;  %456 = vmatprep.mubr.f32.mxu1 %v93_v35  ;;  %v342_v6 = vld [vmem:[#allocation6 + $0x5c0] sm:$0xff]  ;;  %v140_v35 = vld [vmem:[#allocation3 + $0x270] sm:$0xff]  ;;  %v157_v63 = vld [vmem:[#allocation3 + $0x2f8] sm:$0xff] }
  0x9a   :  { %1136 = vmatpush1.bf16.msra.mxu0 %v1135_v7  ;;  %635 = vmatprep.mubr.f32.mxu0 %v113_v8  ;;  %v344_v7 = vld [vmem:[#allocation6 + $0x5d0] sm:$0xff]  ;;  %v347_v8 = vld [vmem:[#allocation6 + $0x5e8] sm:$0xff] }
  0x9b   :  { %1138 = vmatprep.subr.bf16.mxu0 %v1137_v9  ;;  %v349_v9 = vld [vmem:[#allocation6 + $0x5f8] sm:$0xff]  ;;  %v1163_v13 = vpack.c.bf16 %v344_v7, %v342_v6 }
  0x9c   :  { %457 = vmatmul.mubr.f32.gmra.mrb[10].mxu1 %v92_v44  ;;  %v1165_v15 = vpack.c.bf16 %v349_v9, %v347_v8  ;;  %v96_v44 = vld [vmem:[#allocation3 + $0x110] sm:$0xff] }
  0x9d   :  { %636 = vmatmul.mubr.f32.gmra.mrb[16].mxu0 %v112_v16  ;;  %462 = vmatprep.mubr.f32.mxu1 %v99_v45  ;;  %v346_v16 = vld [vmem:[#allocation6 + $0x5e0] sm:$0xff]  ;;  %v103_v45 = vld [vmem:[#allocation3 + $0x148] sm:$0xff] }
  0x9e   :  { %1140 = vmatpush1.bf16.msra.mxu0 %v1139_v17  ;;  %641 = vmatprep.mubr.f32.mxu0 %v119_v18  ;;  %v348_v17 = vld [vmem:[#allocation6 + $0x5f0] sm:$0xff] }
  0x9f   :  { %1142 = vmatprep.subr.bf16.mxu0 %v1141_v19  ;;  %v116_v18 = vld [vmem:[#allocation3 + $0x1b0] sm:$0xff]  ;;  %v123_v19 = vld [vmem:[#allocation3 + $0x1e8] sm:$0xff]  ;;  %v1167_v21 = vpack.c.bf16 %v348_v17, %v346_v16  ;;  %v352_v16 = vlaneseq }
  0xa0   :  { %463 = vmatmul.mubr.f32.gmra.mrb[12].mxu1 %v98_v54  ;;  %v126_v54 = vld [vmem:[#allocation3 + $0x200] sm:$0xff] }
  0xa1   :  { %642 = vmatmul.mubr.f32.gmra.mrb[18].mxu0 %v118_v26  ;;  %468 = vmatprep.mubr.f32.mxu1 %v105_v55  ;;  %v73_v26 = vld [vmem:[#allocation3 + $0x58] sm:$0xff] }
  0xa2   :  { %1144 = vmatpush1.bf16.msra.mxu0 %v1143_v27  ;;  %647 = vmatprep.mubr.f32.mxu0 %v125_v28  ;;  %v128_v27 = vld [vmem:[#allocation3 + $0x210] sm:$0xff]  ;;  %v135_v28 = vld [vmem:[#allocation3 + $0x248] sm:$0xff]  ;;  %v133_v55 = vld [vmem:[#allocation3 + $0x238] sm:$0xff] }
  0xa3   :  { %1146 = vmatprep.subr.bf16.mxu0 %v1145_v29  ;;  %v72_v29 = vld [vmem:[#allocation3 + $0x50] sm:$0xff] }
  0xa4   :  { %469 = vmatmul.mubr.f32.gmra.mrb[14].mxu1 %v104_v0  ;;  %v156_v0 = vld [vmem:[#allocation3 + $0x2f0] sm:$0xff] }
  0xa5   :  { %648 = vmatmul.mubr.f32.gmra.mrb[20].mxu0 %v124_v36  ;;  %474 = vmatprep.mubr.f32.mxu1 %v111_v1  ;;  %v147_v36 = vld [vmem:[#allocation3 + $0x2a8] sm:$0xff] }
  0xa6   :  { %1148 = vmatpush1.bf16.msra.mxu0 %v1147_v37  ;;  %653 = vmatprep.mubr.f32.mxu0 %v131_v38  ;;  %v84_v37 = vld [vmem:[#allocation3 + $0xb0] sm:$0xff]  ;;  %v91_v38 = vld [vmem:[#allocation3 + $0xe8] sm:$0xff] }
  0xa7   :  { %1150 = vmatprep.subr.bf16.mxu0 %v1149_v39  ;;  %v146_v39 = vld [vmem:[#allocation3 + $0x2a0] sm:$0xff]  ;;  %v878_v1 = vld [vmem:[#allocation8 + $0x8] sm:$0xff] }
  0xa8   :  { %475 = vmatmul.mubr.f32.gmra.mrb[16].mxu1 %v110_v10 }
  0xa9   :  { %654 = vmatmul.mubr.f32.gmra.mrb[22].mxu0 %v130_v46  ;;  %480 = vmatprep.mubr.f32.mxu1 %v117_v11  ;;  %v102_v46 = vld [vmem:[#allocation3 + $0x140] sm:$0xff] }
  0xaa   :  { %1152 = vmatpush1.bf16.msra.mxu0 %v1151_v47  ;;  %659 = vmatprep.mubr.f32.mxu0 %v137_v48  ;;  %v109_v47 = vld [vmem:[#allocation3 + $0x178] sm:$0xff]  ;;  %v108_v48 = vld [vmem:[#allocation3 + $0x170] sm:$0xff] }
  0xab   :  { %1154 = vmatprep.subr.bf16.mxu0 %v1153_v49  ;;  %v115_v49 = vld [vmem:[#allocation3 + $0x1a8] sm:$0xff] }
  0xac   :  { %481 = vmatmul.mubr.f32.gmra.mrb[18].mxu1 %v116_v18 }
  0xad   :  { %660 = vmatmul.mubr.f32.gmra.mrb[24].mxu0 %v136_v56  ;;  %486 = vmatprep.mubr.f32.mxu1 %v123_v19  ;;  %v132_v56 = vld [vmem:[#allocation3 + $0x230] sm:$0xff]  ;;  %v1487_v19 = vshrl.u32 %v352_v16, 7 }
  0xae   :  { %1156 = vmatpush1.bf16.msra.mxu0 %v1155_v57  ;;  %665 = vmatprep.mubr.f32.mxu0 %v143_v58  ;;  %v139_v57 = vld [vmem:[#allocation3 + $0x268] sm:$0xff]  ;;  %v138_v58 = vld [vmem:[#allocation3 + $0x260] sm:$0xff] }
  0xaf   :  { %1158 = vmatprep.subr.bf16.mxu0 %v1157_v59  ;;  %v145_v59 = vld [vmem:[#allocation3 + $0x298] sm:$0xff] }
  0xb0   :  { %487 = vmatmul.mubr.f32.gmra.mrb[20].mxu1 %v122_v23  ;;  %v350_v23 = vld [vmem:[%s1606_s2] sm:$0x3]  ;;  %s1409_s2 = smov [#allocation9]  }
  0xb1   :  { %666 = vmatmul.mubr.f32.gmra.mrb[26].mxu0 %v142_v2  ;;  %492 = vmatprep.mubr.f32.mxu1 %v129_v24  ;;  %v949_v2 = vld [vmem:[#allocation2] sm:$0x1]  ;;  %v358_v24 = vsub.s32 1, %v1487_v19  ;;  %s967_s7 = sshll.u32 %s1409_s2, 4  ;;  %s968_s7 = int_to_ptr.vmem [resolvable:$true] %s967_s7 }
  0xb2   :  { %1160 = vmatpush1.bf16.msra.mxu0 %v1159_v3  ;;  %671 = vmatprep.mubr.f32.mxu0 %v149_v4  ;;  %v1408_v3 = vmov 0   ;;  %s1373_s8 = scalar_lea.vmem %s968_s7, 16  ;;  %s1377_s9 = scalar_lea.vmem %s968_s7, 32 }
  0xb3   :  { %1162 = vmatprep.subr.bf16.mxu0 %v1161_v5  ;;  %1306 = vset.pattern.permute.xlu0 %v1408_v3  ;;  %p1374_p10 = scmp.ne.s32.totalorder %s968_s7, %s1373_s8  ;;  %p1378_p11 = scmp.lt.s32.totalorder %s968_s7, %s968_s7 }
  0xb4   :  { %493 = vmatmul.mubr.f32.gmra.mrb[22].mxu1 %v128_v27  ;;  %952 = vperm.xlu0 %1306, %v949_v2   ;;  %p1379_p12 = scmp.lt.s32.totalorder %s1377_s9, %s1373_s8 }
  0xb5   :  { %672 = vmatmul.mubr.f32.gmra.mrb[28].mxu0 %v148_v12  ;;  %498 = vmatprep.mubr.f32.mxu1 %v135_v28  ;;  %v1506_v28 = vrot.slane %v350_v23, %v358_v24 }
  0xb6   :  { %1164 = vmatpush1.bf16.msra.mxu0 %v1163_v13  ;;  %677 = vmatprep.mubr.f32.mxu0 %v155_v14  ;;  %p1380_p13 = por %p1379_p12, %p1378_p11 }
  0xb7   :  { %1166 = vmatprep.subr.bf16.mxu0 %v1165_v15 }
  0xb8   :  { %499 = vmatmul.mubr.f32.gmra.mrb[24].mxu1 %v134_v31  ;;  %p1381_p0 = pnand %p1380_p13, %p1374_p10 }
  0xb9   :  { %678 = vmatmul.mubr.f32.gmra.mrb[30].mxu0 %v154_v20  ;;  %504 = vmatprep.mubr.f32.mxu1 %v141_v32 }
  0xba   :  { %1168 = vmatpush1.bf16.msra.mxu0 %v1167_v21  ;;  %748 = vmatprep.mubr.f32.mxu0 %v67_v22  ;;  %v354_v22 = vsub.s32 0, %v1487_v19 }
  0xbc   :  { %505 = vmatmul.mubr.f32.gmra.mrb[26].mxu1 %v140_v35  ;;  %v1504_v27 = vrot.slane %v350_v23, %v354_v22 }
  0xbd   :  { %749 = vmatmul.mubr.f32.vlgmr.msra.gmra.mrb[0].mxu0 %v66_v25  ;;  %510 = vmatprep.mubr.f32.mxu1 %v147_v36 }
  0xbe   :  { %754 = vmatprep.mubr.f32.mxu0 %v73_v26 }
  0xc0   :  { %511 = vmatmul.mubr.f32.gmra.mrb[28].mxu1 %v146_v39 }
  0xc1   :  { %755 = vmatmul.mubr.f32.gmra.mrb[2].mxu0 %v72_v29  ;;  %516 = vmatprep.mubr.f32.mxu1 %v153_v40 }
  0xc2   :  { %760 = vmatprep.mubr.f32.mxu0 %v79_v30 }
  0xc4   :  { %517 = vmatmul.mubr.f32.gmra.mrb[30].mxu1 %v152_v43 }
  0xc5   :  { %761 = vmatmul.mubr.f32.gmra.mrb[4].mxu0 %v78_v33  ;;  %943 = vmatprep.mubr.f32.mxu1 %v878_v1 }
  0xc6   :  { %766 = vmatprep.mubr.f32.mxu0 %v85_v34 }
  0xc9   :  { %767 = vmatmul.mubr.f32.gmra.mrb[6].mxu0 %v84_v37 }
  0xca   :  { %772 = vmatprep.mubr.f32.mxu0 %v91_v38 }
  0xcd   :  { %773 = vmatmul.mubr.f32.gmra.mrb[8].mxu0 %v90_v41 }
  0xce   :  { %778 = vmatprep.mubr.f32.mxu0 %v97_v42 }
  0xd1   :  { %779 = vmatmul.mubr.f32.gmra.mrb[10].mxu0 %v96_v44 }
  0xd2   :  { %784 = vmatprep.mubr.f32.mxu0 %v103_v45 }
  0xd5   :  { %785 = vmatmul.mubr.f32.gmra.mrb[12].mxu0 %v102_v46 }
  0xd6   :  { %790 = vmatprep.mubr.f32.mxu0 %v109_v47 }
  0xd9   :  { %791 = vmatmul.mubr.f32.gmra.mrb[14].mxu0 %v108_v48 }
  0xda   :  { %796 = vmatprep.mubr.f32.mxu0 %v115_v49 }
  0xdd   :  { %797 = vmatmul.mubr.f32.gmra.mrb[16].mxu0 %v114_v50 }
  0xde   :  { %802 = vmatprep.mubr.f32.mxu0 %v121_v51 }
  0xe1   :  { %803 = vmatmul.mubr.f32.gmra.mrb[18].mxu0 %v120_v52 }
  0xe2   :  { %808 = vmatprep.mubr.f32.mxu0 %v127_v53 }
  0xe5   :  { %809 = vmatmul.mubr.f32.gmra.mrb[20].mxu0 %v126_v54 }
  0xe6   :  { %814 = vmatprep.mubr.f32.mxu0 %v133_v55 }
  0xe9   :  { %815 = vmatmul.mubr.f32.gmra.mrb[22].mxu0 %v132_v56 }
  0xea   :  { %820 = vmatprep.mubr.f32.mxu0 %v139_v57 }
  0xed   :  { %821 = vmatmul.mubr.f32.gmra.mrb[24].mxu0 %v138_v58 }
  0xee   :  { %826 = vmatprep.mubr.f32.mxu0 %v145_v59 }
  0xf1   :  { %827 = vmatmul.mubr.f32.gmra.mrb[26].mxu0 %v144_v60 }
  0xf2   :  { %832 = vmatprep.mubr.f32.mxu0 %v151_v61 }
  0xf5   :  { %833 = vmatmul.mubr.f32.gmra.mrb[28].mxu0 %v150_v62 }
  0xf6   :  { %838 = vmatprep.mubr.f32.mxu0 %v157_v63 }
  0xf9   :  { %839 = vmatmul.mubr.f32.gmra.mrb[30].mxu0 %v156_v0 }
 0x15b   :  { %v428_v4 = vpop.f32.mrb[0].mxu1 }
 0x15c   :  { %v430_v5 = vpop.f32.mrb[1].mxu1  ;;  %v429_v31 = vadd.f32 %v428_v4, %v1504_v27 }
 0x15d   :  { %v431_v32 = vadd.f32 %v430_v5, %v1506_v28 }
 0x15f   :  { %v434_v6 = vpop.f32.mrb[2].mxu1 }
 0x160   :  { %v436_v7 = vpop.f32.mrb[3].mxu1  ;;  %v435_v37 = vadd.f32 %v434_v6, %v1504_v27 }
 0x161   :  { %v437_v40 = vadd.f32 %v436_v7, %v1506_v28 }
 0x163   :  { %v440_v8 = vpop.f32.mrb[4].mxu1 }
 0x164   :  { %v442_v9 = vpop.f32.mrb[5].mxu1  ;;  %v441_v45 = vadd.f32 %v440_v8, %v1504_v27 }
 0x165   :  { %v443_v48 = vadd.f32 %v442_v9, %v1506_v28 }
 0x167   :  { %v446_v10 = vpop.f32.mrb[6].mxu1 }
 0x168   :  { %v448_v11 = vpop.f32.mrb[7].mxu1  ;;  %v447_v58 = vadd.f32 %v446_v10, %v1504_v27 }
 0x169   :  { %v449_v62 = vadd.f32 %v448_v11, %v1506_v28 }
 0x16b   :  { %v452_v12 = vpop.f32.mrb[8].mxu1 }
 0x16c   :  { %v454_v13 = vpop.f32.mrb[9].mxu1  ;;  %v453_v3 = vadd.f32 %v452_v12, %v1504_v27 }
 0x16d   :  { %v455_v6 = vadd.f32 %v454_v13, %v1506_v28 }
 0x16f   :  { %v1479_v14 = vpop.f32.mrb[10].mxu1 }
 0x170   :  { %v1481_v15 = vpop.f32.mrb[11].mxu1 }
 0x171   :  { %v461_v13 = vadd.f32 %v1481_v15, %v1506_v28 }
 0x173   :  { %v1483_v17 = vpop.f32.mrb[12].mxu1 }
 0x174   :  { %v1485_v18 = vpop.f32.mrb[13].mxu1 }
 0x177   :  { %v1489_v20 = vpop.f32.mrb[14].mxu1 }
 0x178   :  { %v1491_v21 = vpop.f32.mrb[15].mxu1 }
 0x17b   :  { %v1498_v25 = vpop.f32.mrb[16].mxu1 }
 0x17c   :  { %v1500_v26 = vpop.f32.mrb[17].mxu1 }
 0x17f   :  { %v1508_v29 = vpop.f32.mrb[18].mxu1 }
 0x180   :  { %v1510_v30 = vpop.f32.mrb[19].mxu1 }
 0x183   :  { %v1514_v33 = vpop.f32.mrb[20].mxu1 }
 0x184   :  { %v1516_v34 = vpop.f32.mrb[21].mxu1 }
 0x187   :  { %v1520_v41 = vpop.f32.mrb[22].mxu1 }
 0x188   :  { %v1522_v42 = vpop.f32.mrb[23].mxu1 }
 0x18b   :  { %v1526_v49 = vpop.f32.mrb[24].mxu1 }
 0x18c   :  { %v1528_v52 = vpop.f32.mrb[25].mxu1 }
 0x18f   :  { %v1532_v63 = vpop.f32.mrb[26].mxu1 }
 0x190   :  { %v750_v35 = vpop.f32.mrb[0].mxu0  ;;  %v1534_v0 = vpop.f32.mrb[27].mxu1 }
 0x191   :  { %v1202_v36 = vadd.f32 %v750_v35, %v429_v31  ;;  %v752_v38 = vpop.f32.mrb[1].mxu0 }
 0x192   :  { %v1204_v39 = vadd.f32 %v752_v38, %v431_v32  ;;  %v459_v32 = vadd.f32 %v1479_v14, %v1504_v27  ;;  %v467_v14 = vadd.f32 %v1485_v18, %v1506_v28  ;;  %v477_v18 = vadd.f32 %v1498_v25, %v1504_v27 }
 0x193   :  { %v845_v50 = vmax.f32 %v1202_v36, 0.0  ;;  %v1538_v7 = vpop.f32.mrb[28].mxu1  ;;  %v485_v25 = vadd.f32 %v1510_v30, %v1506_v28  ;;  %v495_v30 = vadd.f32 %v1520_v41, %v1504_v27 }
 0x194   :  { %v756_v43 = vpop.f32.mrb[2].mxu0  ;;  %v846_v53 = vmax.f32 %v1204_v39, 0.0  ;;  %v1540_v10 = vpop.f32.mrb[29].mxu1 }
 0x195   :  { %v1206_v44 = vadd.f32 %v756_v43, %v435_v37  ;;  %v758_v46 = vpop.f32.mrb[3].mxu0  ;;  %v465_v43 = vadd.f32 %v1483_v17, %v1504_v27  ;;  %v473_v17 = vadd.f32 %v1491_v21, %v1506_v28  ;;  %v483_v21 = vadd.f32 %v1508_v29, %v1504_v27 }
 0x196   :  { %v1208_v47 = vadd.f32 %v758_v46, %v437_v40 }
 0x197   :  { %v847_v51 = vmax.f32 %v1206_v44, 0.0  ;;  %v1546_v37 = vpop.f32.mrb[30].mxu1 }
 0x198   :  { %v848_v54 = vmax.f32 %v1208_v47, 0.0  ;;  %v762_v55 = vpop.f32.mrb[4].mxu0  ;;  %v1548_v38 = vpop.f32.mrb[31].mxu1 }
 0x199   :  { %v1171_v56 = vpack.c.bf16 %v847_v51, %v845_v50  ;;  %v1210_v57 = vadd.f32 %v762_v55, %v441_v45  ;;  %v764_v59 = vpop.f32.mrb[5].mxu0 }
 0x19a   :  { %v1169_v60 = vpack.c.bf16 %v848_v54, %v846_v53  ;;  %v1212_v61 = vadd.f32 %v764_v59, %v443_v48  ;;  %v471_v54 = vadd.f32 %v1489_v20, %v1504_v27 }
 0x19b   :  { %v849_v8 = vmax.f32 %v1210_v57, 0.0 }
 0x19c   :  { %v768_v1 = vpop.f32.mrb[6].mxu0  ;;  %1170 = vmatprep.subr.bf16.mxu1 %v1169_v60  ;;  %v850_v11 = vmax.f32 %v1212_v61, 0.0 }
 0x19d   :  { %v1214_v2 = vadd.f32 %v768_v1, %v447_v58  ;;  %v770_v4 = vpop.f32.mrb[7].mxu0  ;;  %1172 = vmatpush1.bf16.xpose.msra.mxu1 %v1171_v56 }
 0x19e   :  { %v1216_v5 = vadd.f32 %v770_v4, %v449_v62  ;;  %v479_v62 = vadd.f32 %v1500_v26, %v1506_v28  ;;  %v489_v26 = vadd.f32 %v1514_v33, %v1504_v27  ;;  %v497_v33 = vadd.f32 %v1522_v42, %v1506_v28 }
 0x19f   :  { %v851_v9 = vmax.f32 %v1214_v2, 0.0  ;;  %v507_v42 = vadd.f32 %v1532_v63, %v1504_v27 }
 0x1a0   :  { %v852_v16 = vmax.f32 %v1216_v5, 0.0  ;;  %v774_v23 = vpop.f32.mrb[8].mxu0 }
 0x1a1   :  { %v1175_v24 = vpack.c.bf16 %v851_v9, %v849_v8  ;;  %v1218_v31 = vadd.f32 %v774_v23, %v453_v3  ;;  %v776_v12 = vpop.f32.mrb[9].mxu0 }
 0x1a2   :  { %v1173_v35 = vpack.c.bf16 %v852_v16, %v850_v11  ;;  %v1220_v36 = vadd.f32 %v776_v12, %v455_v6 }
 0x1a3   :  { %v853_v46 = vmax.f32 %v1218_v31, 0.0 }
 0x1a4   :  { %v780_v39 = vpop.f32.mrb[10].mxu0  ;;  %1174 = vmatprep.subr.bf16.mxu1 %v1173_v35  ;;  %v854_v48 = vmax.f32 %v1220_v36, 0.0 }
 0x1a5   :  { %v1222_v40 = vadd.f32 %v780_v39, %v459_v32  ;;  %v782_v44 = vpop.f32.mrb[11].mxu0  ;;  %1176 = vmatpush1.bf16.xpose.msra.mxu1 %v1175_v24  ;;  %v491_v32 = vadd.f32 %v1516_v34, %v1506_v28  ;;  %v501_v34 = vadd.f32 %v1526_v49, %v1504_v27  ;;  %v509_v49 = vadd.f32 %v1534_v0, %v1506_v28 }
 0x1a6   :  { %v1224_v45 = vadd.f32 %v782_v44, %v461_v13  ;;  %v519_v0 = vadd.f32 %v1546_v37, %v1504_v27  ;;  %v953_v37 = vpop.permute.xlu0 %952 }
 0x1a7   :  { %v855_v47 = vmax.f32 %v1222_v40, 0.0 }
 0x1a8   :  { %v856_v15 = vmax.f32 %v1224_v45, 0.0  ;;  %v786_v50 = vpop.f32.mrb[12].mxu0 }
 0x1a9   :  { %v1179_v51 = vpack.c.bf16 %v855_v47, %v853_v46  ;;  %v1226_v53 = vadd.f32 %v786_v50, %v465_v43  ;;  %v788_v55 = vpop.f32.mrb[13].mxu0 }
 0x1aa   :  { %v1177_v56 = vpack.c.bf16 %v856_v15, %v854_v48  ;;  %v1228_v57 = vadd.f32 %v788_v55, %v467_v14  ;;  %v503_v15 = vadd.f32 %v1528_v52, %v1506_v28  ;;  %v513_v52 = vadd.f32 %v1538_v7, %v1504_v27  ;;  %v877_v27 = vld [vmem:[#allocation8] sm:$0xff] }
 0x1ab   :  { %v857_v1 = vmax.f32 %v1226_v53, 0.0  ;;  %v521_v7 = vadd.f32 %v1548_v38, %v1506_v28 }
 0x1ac   :  { %v792_v58 = vpop.f32.mrb[14].mxu0  ;;  %1178 = vmatprep.subr.bf16.mxu1 %v1177_v56  ;;  %v858_v2 = vmax.f32 %v1228_v57, 0.0 }
 0x1ad   :  { %v1230_v59 = vadd.f32 %v792_v58, %v471_v54  ;;  %v794_v60 = vpop.f32.mrb[15].mxu0  ;;  %1180 = vmatpush1.bf16.xpose.msra.mxu1 %v1179_v51 }
 0x1ae   :  { %v1232_v61 = vadd.f32 %v794_v60, %v473_v17 }
 0x1af   :  { %v859_v20 = vmax.f32 %v1230_v59, 0.0 }
 0x1b0   :  { %v860_v3 = vmax.f32 %v1232_v61, 0.0  ;;  %v798_v4 = vpop.f32.mrb[16].mxu0 }
 0x1b1   :  { %v1183_v5 = vpack.c.bf16 %v859_v20, %v857_v1  ;;  %v1234_v6 = vadd.f32 %v798_v4, %v477_v18  ;;  %v800_v8 = vpop.f32.mrb[17].mxu0 }
 0x1b2   :  { %v1181_v9 = vpack.c.bf16 %v860_v3, %v858_v2  ;;  %v1236_v11 = vadd.f32 %v800_v8, %v479_v62  ;;  %v515_v62 = vadd.f32 %v1540_v10, %v1506_v28  ;;  %v958_v28 = vrot.slane %v953_v37, %v354_v22 }
 0x1b3   :  { %v861_v12 = vmax.f32 %v1234_v6, 0.0 }
 0x1b4   :  { %v804_v16 = vpop.f32.mrb[18].mxu0  ;;  %1182 = vmatprep.subr.bf16.mxu1 %v1181_v9  ;;  %v862_v35 = vmax.f32 %v1236_v11, 0.0 }
 0x1b5   :  { %v1238_v23 = vadd.f32 %v804_v16, %v483_v21  ;;  %v806_v24 = vpop.f32.mrb[19].mxu0  ;;  %1184 = vmatpush1.bf16.xpose.msra.mxu1 %v1183_v5 }
 0x1b6   :  { %v1240_v31 = vadd.f32 %v806_v24, %v485_v25 }
 0x1b7   :  { %v863_v29 = vmax.f32 %v1238_v23, 0.0 }
 0x1b8   :  { %v864_v36 = vmax.f32 %v1240_v31, 0.0  ;;  %v810_v13 = vpop.f32.mrb[20].mxu0 }
 0x1b9   :  { %v1187_v39 = vpack.c.bf16 %v863_v29, %v861_v12  ;;  %v1242_v40 = vadd.f32 %v810_v13, %v489_v26  ;;  %v812_v43 = vpop.f32.mrb[21].mxu0 }
 0x1ba   :  { %v1185_v44 = vpack.c.bf16 %v864_v36, %v862_v35  ;;  %v1244_v45 = vadd.f32 %v812_v43, %v491_v32 }
 0x1bb   :  { %v865_v50 = vmax.f32 %v1242_v40, 0.0 }
 0x1bc   :  { %v816_v14 = vpop.f32.mrb[22].mxu0  ;;  %1186 = vmatprep.subr.bf16.mxu1 %v1185_v44  ;;  %v866_v51 = vmax.f32 %v1244_v45, 0.0 }
 0x1bd   :  { %v1246_v46 = vadd.f32 %v816_v14, %v495_v30  ;;  %v818_v47 = vpop.f32.mrb[23].mxu0  ;;  %1188 = vmatpush1.bf16.xpose.msra.mxu1 %v1187_v39 }
 0x1be   :  { %v1248_v48 = vadd.f32 %v818_v47, %v497_v33 }
 0x1bf   :  { %v867_v41 = vmax.f32 %v1246_v46, 0.0 }
 0x1c0   :  { %v868_v53 = vmax.f32 %v1248_v48, 0.0  ;;  %v822_v54 = vpop.f32.mrb[24].mxu0 }
 0x1c1   :  { %v1191_v55 = vpack.c.bf16 %v867_v41, %v865_v50  ;;  %v1250_v56 = vadd.f32 %v822_v54, %v501_v34  ;;  %v824_v57 = vpop.f32.mrb[25].mxu0 }
 0x1c2   :  { %v1189_v17 = vpack.c.bf16 %v868_v53, %v866_v51  ;;  %v1252_v58 = vadd.f32 %v824_v57, %v503_v15 }
 0x1c3   :  { %v869_v1 = vmax.f32 %v1250_v56, 0.0 }
 0x1c4   :  { %v828_v59 = vpop.f32.mrb[26].mxu0  ;;  %1190 = vmatprep.subr.bf16.mxu1 %v1189_v17  ;;  %v870_v20 = vmax.f32 %v1252_v58, 0.0 }
 0x1c5   :  { %v1254_v18 = vadd.f32 %v828_v59, %v507_v42  ;;  %v830_v60 = vpop.f32.mrb[27].mxu0  ;;  %1192 = vmatpush1.bf16.xpose.msra.mxu1 %v1191_v55 }
 0x1c6   :  { %v1256_v61 = vadd.f32 %v830_v60, %v509_v49 }
 0x1c7   :  { %v871_v63 = vmax.f32 %v1254_v18, 0.0 }
 0x1c8   :  { %v872_v2 = vmax.f32 %v1256_v61, 0.0  ;;  %v834_v3 = vpop.f32.mrb[28].mxu0 }
 0x1c9   :  { %v1195_v4 = vpack.c.bf16 %v871_v63, %v869_v1  ;;  %v1258_v5 = vadd.f32 %v834_v3, %v513_v52  ;;  %v836_v6 = vpop.f32.mrb[29].mxu0 }
 0x1ca   :  { %v1193_v21 = vpack.c.bf16 %v872_v2, %v870_v20  ;;  %v1260_v8 = vadd.f32 %v836_v6, %v515_v62 }
 0x1cb   :  { %v873_v16 = vmax.f32 %v1258_v5, 0.0 }
 0x1cc   :  { %v840_v9 = vpop.f32.mrb[30].mxu0  ;;  %1194 = vmatprep.subr.bf16.mxu1 %v1193_v21  ;;  %v874_v26 = vmax.f32 %v1260_v8, 0.0 }
 0x1cd   :  { %v1262_v11 = vadd.f32 %v840_v9, %v519_v0  ;;  %v842_v10 = vpop.f32.mrb[31].mxu0  ;;  %1196 = vmatpush1.bf16.xpose.msra.mxu1 %v1195_v4 }
 0x1ce   :  { %v1264_v25 = vadd.f32 %v842_v10, %v521_v7 }
 0x1cf   :  { %v875_v23 = vmax.f32 %v1262_v11, 0.0 }
 0x1d0   :  { %v876_v24 = vmax.f32 %v1264_v25, 0.0 }
 0x1d1   :  { %v1199_v31 = vpack.c.bf16 %v875_v23, %v873_v16 }
 0x1d2   :  { %v1197_v32 = vpack.c.bf16 %v876_v24, %v874_v26 }
 0x1d4   :  { %1198 = vmatprep.subr.bf16.mxu1 %v1197_v32 }
 0x1d5   :  { %1200 = vmatpush1.bf16.xpose.msra.mxu1 %v1199_v31 }
 0x1dc   :  { %944 = vmatmul.mubr.f32.vlgmr.msra.gmra.mrb[32].mxu1 %v877_v27 }
 0x2af   :  { %v945_v38 = vpop.f32.mrb[32].mxu1 }
 0x2b0   :  { %v959_v12 = vadd.f32 %v958_v28, %v945_v38  ;;  %v947_v29 = vpop.f32.mrb[33].mxu1 }
 0x2b2   :  { %960 = vst [vmem:[#allocation9] sm:$0x1] %v959_v12 }
 0x2b3   :  { %1384 = shalt.err (!%p1381_p0)
}
 0x2b4   :  { %s1385_s12 = scalar_lea.hbm %s1609_s5, 16 }
 0x2b5   :  { %p1386_p1 = scmp.ne.s32.totalorder %s1609_s5, %s1385_s12  ;;  %p1389_p2 = scmp.lt.u32.totalorder %s1385_s12, %s1609_s5 }
 0x2b7   :  { %p1391_p3 = pnand %p1389_p2, %p1386_p1 }
 0x2b9   :  { %1394 = shalt.err (!%p1391_p3)
}
 0x2ba   :  { %970 = dma.vmem_to_hbm [thread:$0]  %s968_s7, 16, %s1609_s5, [#allocation5]  }
 0x2bb   :  { %1399 = dma.done.wait [#allocation5], 16  }
 0x2bc   :  { %1400 = vsyncadd [#allocation5], 4294967280 }
 0x2bd   :  { %974 = vsyncpa [#allocation4], 1 }
 0x2be   :  { %975 = vsyncpa [#allocation7], 1 }
 0x2bf   :  { %976 = vsyncpa [#allocation5], 1 }

</bundles_post_ra>
